<compile_context>
chip_gen: v6e
topology: v6e:2x2x1
jax: 0.10.0
libtpu: 0.0.40
codegen_flags: <defaults>
</compile_context>

<pallas_src>
import functools

import jax
import jax.numpy as jnp
from jax.experimental import pallas as pl
from jax.experimental.pallas import tpu as pltpu

LANE = 128


def _round_up(x: int, m: int) -> int:
    return (x + m - 1) // m * m


def _choose_row_tile(b_p8: int, row_tile: int) -> int:
    """Largest multiple-of-8 row tile <= row_tile with bounded padding slack."""
    cap = max(8, min(row_tile, b_p8) // 8 * 8)
    max_slack = max(b_p8 // 8, 8)          # allow at most ~12.5% padded rows
    for tb in range(cap, 7, -8):
        if _round_up(b_p8, tb) - b_p8 <= max_slack:
            return tb
    return 8


def _choose_col_tile(n_p: int, dim_p: int, tb: int, nb: int,
                     in_isz: int, out_isz: int, vmem_budget: int) -> int:
    """Largest multiple-of-128 divisor of n_p whose working set fits VMEM."""
    def fits(tn):
        vmem = (dim_p * tn * in_isz          # weight, single-buffered
                + tn * 4                     # bias,   single-buffered
                + 2 * tb * dim_p * in_isz    # x tile, double-buffered
                + 2 * tb * tn * out_isz      # out tile, double-buffered
                + 2 * tb * 4)                # mask tile, double-buffered
        return vmem <= vmem_budget

    cands = [t for t in range(n_p, 0, -LANE) if n_p % t == 0]
    tn = next((t for t in cands if fits(t)), cands[-1])
    # v7x has 2 TensorCores: with a single B tile, split N (when cheap) so the
    # "parallel" grid has >=2 steps and both cores get work.
    if nb == 1 and tn == n_p and n_p >= 2 * LANE and (n_p // 2) % LANE == 0:
        tn = n_p // 2
    return tn


def prepare_output_proj(weight_t, bias, *, compute_dtype=jnp.bfloat16):
    """Pad + cast nn.Linear params once (hoisted out of the per-call path).

    weight_t: [dim, output_dim] (transpose of torch nn.Linear.weight)
    bias:     [output_dim]
    """
    dim, output_dim = weight_t.shape
    dim_p = _round_up(dim, LANE)
    n_p = _round_up(output_dim, LANE)
    w_p = jnp.pad(weight_t, ((0, dim_p - dim), (0, n_p - output_dim)))
    w_p = w_p.astype(compute_dtype)
    b_p = jnp.pad(bias, (0, n_p - output_dim)).astype(jnp.float32).reshape(1, n_p)
    return w_p, b_p


def _joint_embed_kernel(x_ref, w_ref, b_ref, m_ref, out_ref):
    # output_proj: x @ W + b  (MXU matmul, f32 accumulate), then zero empties.
    y = jnp.dot(x_ref[...], w_ref[...], preferred_element_type=jnp.float32)
    out_ref[...] = ((y + b_ref[...]) * m_ref[...]).astype(out_ref.dtype)


def joint_embedding_conditioner_forward(embed, w_padded, b_padded, empty_idx, *,
                                        output_dim, row_tile=512,
                                        out_dtype=jnp.float32,
                                        vmem_budget=48 << 20):
    """JointEmbeddingConditioner.forward (quantizer=None).

    Args:
      embed:     [B, dim] latent embedding (from _get_embed).
      w_padded:  [dim_p, n_p] padded/cast weight from prepare_output_proj.
      b_padded:  [1, n_p] padded f32 bias from prepare_output_proj.
      empty_idx: [n_empty] int32 indices of "empty" batch entries.
    Returns:
      (out_embed [B, 1, output_dim], mask [B, 1])
    """
    B, dim = embed.shape
    dim_p, n_p = w_padded.shape
    compute_dtype = w_padded.dtype
    in_isz = jnp.dtype(compute_dtype).itemsize
    out_isz = jnp.dtype(out_dtype).itemsize

    # mask = ones(B, 1); mask[empty_idx, :] = 0 -- computed in the wrapper and
    # returned directly; only a tiny (tb, 1) tile goes through the kernel.
    mask = jnp.ones((B, 1), jnp.float32).at[empty_idx, :].set(0.0)

    # Row tiling with bounded padding slack.
    b_p8 = _round_up(B, 8)
    tb = _choose_row_tile(b_p8, row_tile)
    b_p = _round_up(b_p8, tb)
    nb = b_p // tb

    # Column tiling against the VMEM budget (and v7x dual-core occupancy).
    tn = _choose_col_tile(n_p, dim_p, tb, nb, in_isz, out_isz, vmem_budget)
    nn = n_p // tn

    x_p = jnp.pad(embed, ((0, b_p - B), (0, dim_p - dim))).astype(compute_dtype)
    mask_p = jnp.pad(mask, ((0, b_p - B), (0, 0)))

    weight_bytes = dim_p * n_p * in_isz * (1 if nn == 1 else nb)
    bytes_accessed = (in_isz * b_p * dim_p + weight_bytes
                      + 4 * (n_p + b_p) + out_isz * b_p * n_p)
    flops = 2 * b_p * dim_p * n_p

    vmem_used = (dim_p * tn * in_isz + tn * 4
                 + 2 * tb * (dim_p * in_isz + tn * out_isz) + 2 * tb * 4)
    vmem_limit = int(min(max(2 * vmem_used, 32 << 20), 64 << 20))

    out_p = pl.pallas_call(
        _joint_embed_kernel,
        out_shape=jax.ShapeDtypeStruct((b_p, n_p), out_dtype),
        grid=(nb, nn),
        in_specs=[
            # activations: tiled over B, default double-buffering
            pl.BlockSpec((tb, dim_p), lambda i, j: (i, 0)),
            # weight / bias: constant over the B axis -> VMEM-resident;
            # single-buffered (a second buffer would never be used)
            pl.BlockSpec((dim_p, tn), lambda i, j: (0, j),
                         pipeline_mode=pl.Buffered(1)),
            pl.BlockSpec((1, tn), lambda i, j: (0, j),
                         pipeline_mode=pl.Buffered(1)),
            # per-row keep mask (broadcast in-kernel over lanes)
            pl.BlockSpec((tb, 1), lambda i, j: (i, 0)),
        ],
        out_specs=pl.BlockSpec((tb, tn), lambda i, j: (i, j)),
        compiler_params=pltpu.CompilerParams(
            dimension_semantics=("parallel", "parallel"),
            vmem_limit_bytes=vmem_limit),
        cost_estimate=pl.CostEstimate(
            flops=flops, transcendentals=0, bytes_accessed=bytes_accessed),
    )(x_p, w_padded, b_padded, mask_p)

    # Slice off padding; view(-1, 1, output_dim) is pure glue reshape.
    out_embed = out_p[:B, :output_dim].reshape(B, 1, output_dim)
    return out_embed, mask


if __name__ == "__main__":
    key = jax.random.PRNGKey(0)
    k_embed, k_w, k_b = jax.random.split(key, 3)

    B = 4            # batch
    dim = 32         # conditioner hidden dim
    output_dim = 64  # conditioner output dim

    # Synthetic latent embedding (would come from _get_embed) + empty indexes.
    embed = jax.random.normal(k_embed, (B, dim), dtype=jnp.float32)
    empty_idx = jnp.array([1], dtype=jnp.int32)        # entry 1 is "empty"

    # Deterministic nn.Linear(dim, output_dim) parameters.
    # PyTorch weight is [output_dim, dim]; we store its transpose.
    bound = 1.0 / jnp.sqrt(jnp.float32(dim))
    weight_t = jax.random.uniform(k_w, (dim, output_dim),
                                  minval=-bound, maxval=bound, dtype=jnp.float32)
    bias = jax.random.uniform(k_b, (output_dim,),
                              minval=-bound, maxval=bound, dtype=jnp.float32)

    # Pad + cast parameters once, outside the per-call path.
    w_p, b_p = prepare_output_proj(weight_t, bias, compute_dtype=jnp.bfloat16)

    fwd = jax.jit(functools.partial(joint_embedding_conditioner_forward,
                                    output_dim=output_dim))
    out_embed, mask = fwd(embed, w_p, b_p, empty_idx)
    out_embed = jax.block_until_ready(out_embed)
    mask = jax.block_until_ready(mask)

    # Sanity check against plain-JAX f32 reference (bf16 inputs -> relaxed tol).
    ref_mask = jnp.ones((B, 1), jnp.float32).at[empty_idx, :].set(0.0)
    ref = (embed @ weight_t + bias).reshape(B, 1, output_dim) * ref_mask[..., None]
    assert out_embed.shape == (B, 1, output_dim)
    assert mask.shape == (B, 1)
    assert jnp.allclose(out_embed, ref, atol=2e-2, rtol=2e-2)
    assert jnp.allclose(mask, ref_mask)

    print("KERNEL_OK")
</pallas_src>

<mosaic_0001>
module attributes {stable_mosaic.version = 11 : i64} {
  func.func @_joint_embed_kernel(%arg0: i32, %arg1: i32, %arg2: memref<8x128xbf16, #tpu.memory_space<vmem>>, %arg3: memref<128x128xbf16, #tpu.memory_space<vmem>>, %arg4: memref<1x128xf32, #tpu.memory_space<vmem>>, %arg5: memref<8x1xf32, #tpu.memory_space<vmem>>, %arg6: memref<8x128xf32, #tpu.memory_space<vmem>>) attributes {dimension_semantics = [#tpu.dimension_semantics<parallel>, #tpu.dimension_semantics<parallel>], iteration_bounds = array<i64: 1, 1>, scalar_prefetch = 0 : i64, scratch_operands = 0 : i64, tpu.core_type = #tpu.core_type<tc>, window_params = [{transform_indices = @transform_0, window_bounds = array<i64: 8, 128>}, {pipeline_mode = #tpu.pipeline_mode<synchronous>, transform_indices = @transform_1, window_bounds = array<i64: 128, 128>}, {pipeline_mode = #tpu.pipeline_mode<synchronous>, transform_indices = @transform_2, window_bounds = array<i64: 1, 128>}, {transform_indices = @transform_3, window_bounds = array<i64: 8, 1>}, {transform_indices = @transform_4, window_bounds = array<i64: 8, 128>}]} {
    %c0 = arith.constant 0 : index
    %c0_0 = arith.constant 0 : index
    %0 = vector.load %arg2[%c0, %c0_0] : memref<8x128xbf16, #tpu.memory_space<vmem>>, vector<8x128xbf16>
    %c0_1 = arith.constant 0 : index
    %c0_2 = arith.constant 0 : index
    %1 = vector.load %arg3[%c0_1, %c0_2] : memref<128x128xbf16, #tpu.memory_space<vmem>>, vector<128x128xbf16>
    %cst = arith.constant dense<0.000000e+00> : vector<8x128xf32>
    %2 = tpu.matmul %0, %1, %cst {dimension_numbers = #tpu.dot_dimension_numbers<[1], [0], [0], [1], [0, 0, 1, 1], [], []>} : vector<8x128xbf16>, vector<128x128xbf16>, vector<8x128xf32> -> vector<8x128xf32>
    %c0_3 = arith.constant 0 : index
    %c0_4 = arith.constant 0 : index
    %3 = vector.load %arg4[%c0_3, %c0_4] : memref<1x128xf32, #tpu.memory_space<vmem>>, vector<1x128xf32>
    %4 = vector.broadcast %3 : vector<1x128xf32> to vector<8x128xf32>
    %5 = arith.addf %2, %4 : vector<8x128xf32>
    %c0_5 = arith.constant 0 : index
    %c0_6 = arith.constant 0 : index
    %6 = vector.load %arg5[%c0_5, %c0_6] : memref<8x1xf32, #tpu.memory_space<vmem>>, vector<8x1xf32>
    %7 = vector.broadcast %6 : vector<8x1xf32> to vector<8x128xf32>
    %8 = arith.mulf %5, %7 : vector<8x128xf32>
    %c0_7 = arith.constant 0 : index
    %c0_8 = arith.constant 0 : index
    %9 = vector.load %arg6[%c0_7, %c0_8] : memref<8x128xf32, #tpu.memory_space<vmem>>, vector<8x128xf32>
    tpu.vector_store %arg6[%c0_7, %c0_8], %8 {strides = array<i32>} : memref<8x128xf32, #tpu.memory_space<vmem>>, vector<8x128xf32>,
    return
  }
  func.func @transform_0(%arg0: i32, %arg1: i32) -> (i32, i32) {
    %c0_i32 = arith.constant 0 : i32
    %c0_i32_0 = arith.constant 0 : i32
    return %arg0, %c0_i32 : i32, i32
  }
  func.func @transform_1(%arg0: i32, %arg1: i32) -> (i32, i32) {
    %c0_i32 = arith.constant 0 : i32
    %c0_i32_0 = arith.constant 0 : i32
    return %c0_i32, %arg1 : i32, i32
  }
  func.func @transform_2(%arg0: i32, %arg1: i32) -> (i32, i32) {
    %c0_i32 = arith.constant 0 : i32
    %c0_i32_0 = arith.constant 0 : i32
    return %c0_i32, %arg1 : i32, i32
  }
  func.func @transform_3(%arg0: i32, %arg1: i32) -> (i32, i32) {
    %c0_i32 = arith.constant 0 : i32
    %c0_i32_0 = arith.constant 0 : i32
    return %arg0, %c0_i32 : i32, i32
  }
  func.func @transform_4(%arg0: i32, %arg1: i32) -> (i32, i32) {
    %c0_i32 = arith.constant 0 : i32
    return %arg0, %arg1 : i32, i32
  }
}

</mosaic_0001>

<bundles_post_ra>
// kernel: joint_embedding_conditioner_forward.1
= control target key start
LH: loop header
LB: loop body
LE: loop exit
PB: predicated region body
PF: predicated region fallthrough
CT: control target
= control target key end

     0   :  { %v192_v0 = vmov 0.0   ;;  %vm193_vm0 = vmmov 0   ;;  %v194_v2 = vmov 0   ;;  %s256_s1 = inlined_call_operand.vmem [shape: bf16[128,128], index: 1, kind: input, shape index: {}]   ;;  %s257_s3 = inlined_call_operand.vmem [shape: f32[8,1], index: 3, kind: input, shape index: {}]   ;;  %s258_s0 = inlined_call_operand.vmem [shape: bf16[8,128], index: 0, kind: input, shape index: {}]   ;;  %s259_s2 = inlined_call_operand.vmem [shape: f32[1,128], index: 2, kind: input, shape index: {}]   ;;  %s260_s4 = inlined_call_operand.vmem [shape: f32[8,128], index: 4, kind: output, shape index: {}]  }
   0x1   :  { %160 = vmatprep.subr.bf16.mxu0 %v192_v0  ;;  %v184_v1 = vld [vmem:[%s256_s1 + $0x38] sm:$0xff]   ;;  %176 = vmatprep.mubr.msk.bf16.mxu0 %vm193_vm0, %v192_v0  ;;  %v185_v3 = vld [vmem:[%s256_s1 + $0x30] sm:$0xff]   ;;  %v186_v4 = vld [vmem:[%s256_s1 + $0x28] sm:$0xff]  }
   0x2   :  { %183 = vset.pattern.permute.xlu0 %v194_v2  ;;  %161 = vmatpush3.bf16.msra.mxu0 %v184_v1  ;;  %v130_v5 = vld [vmem:[%s257_s3] sm:$0xff]  ;;  %v188_v7 = vld [vmem:[%s256_s1 + $0x18] sm:$0xff]   ;;  %v189_v8 = vld [vmem:[%s256_s1 + $0x10] sm:$0xff]  }
   0x3   :  { %162 = vmatprep.subr.bf16.mxu0 %v192_v0  ;;  %133 = vperm.xlu0 %183, %v130_v5   ;;  %v187_v6 = vld [vmem:[%s256_s1 + $0x20] sm:$0xff]   ;;  %v190_v9 = vld [vmem:[%s256_s1 + $0x8] sm:$0xff]  }
   0x4   :  { %v191_v10 = vld [vmem:[%s256_s1] sm:$0xff]  }
   0x5   :  { %v18_v11 = vld [vmem:[%s258_s0] sm:$0xf] }
   0x6   :  { %163 = vmatpush3.bf16.msra.mxu0 %v185_v3  ;;  %v142_v12 = vld [vmem:[%s259_s2] ss:$0 sm:$0xff] }
   0x7   :  { %164 = vmatprep.subr.bf16.mxu0 %v192_v0 }
   0xa   :  { %165 = vmatpush3.bf16.msra.mxu0 %v186_v4 }
   0xb   :  { %166 = vmatprep.subr.bf16.mxu0 %v192_v0 }
   0xe   :  { %167 = vmatpush3.bf16.msra.mxu0 %v187_v6 }
   0xf   :  { %168 = vmatprep.subr.bf16.mxu0 %v192_v0 }
  0x12   :  { %169 = vmatpush3.bf16.msra.mxu0 %v188_v7 }
  0x13   :  { %170 = vmatprep.subr.bf16.mxu0 %v192_v0 }
  0x16   :  { %171 = vmatpush3.bf16.msra.mxu0 %v189_v8 }
  0x17   :  { %172 = vmatprep.subr.bf16.mxu0 %v192_v0 }
  0x1a   :  { %173 = vmatpush3.bf16.msra.mxu0 %v190_v9 }
  0x1b   :  { %174 = vmatprep.subr.bf16.mxu0 %v192_v0 }
  0x1e   :  { %175 = vmatpush3.bf16.msra.mxu0 %v191_v10 }
  0x21   :  { %177 = vmatmul.mubr.bf16.vlgmr.msra.gmra.mxu0 %v18_v11 }
  0x7e   :  { %v134_v14 = vpop.permute.xlu0 %133 }
  0xe1   :  { %v124_v13 = vpop.f32.mrf.mxu0 }
  0xe2   :  { %v125_v15 = vadd.f32 %v142_v12, %v124_v13 }
  0xe3   :  { %v178_v16 = vpop.f32.mrf.mxu0 }
  0xe4   :  { %v136_v17 = vmul.f32 %v134_v14, %v125_v15 }
  0xe5   :  { %v127_v18 = vpop.f32.mrf.mxu0 }
  0xe6   :  { %137 = vst [vmem:[%s260_s4] sm:$0xff] %v136_v17 }
  0xe7   :  { %v179_v19 = vpop.f32.mrf.mxu0 }

</bundles_post_ra>
